<compile_context>
chip_gen: v5e
topology: v5e:2x2
jax: 0.10.0
libtpu: 0.0.40
codegen_flags: <defaults>
</compile_context>

<pallas_src>
import functools

import jax
import jax.numpy as jnp
from jax.experimental import pallas as pl
from jax.experimental.pallas import tpu as pltpu


# ----------------------------- slab layout ------------------------------------

def _slab_offsets(H):
    """Static row offsets inside the (n_rows, 128) packed weight slab."""
    r_wih = 128                # wf occupies rows 0..127 (K zero-padded to 128)
    r_whh = r_wih + H
    r_wh1 = r_whh + H
    r_wh2 = r_wh1 + H
    r_b = r_wh2 + 2 * H        # 4 bias rows: bf | bl | bh1 | bh2
    n_rows = r_b + 8           # pad row count to a multiple of 8
    return r_wih, r_whh, r_wh1, r_wh2, r_b, n_rows


# ----------------------------- kernel math -------------------------------------

def _sigmoid(z):
    # Single EUP tanh instead of exp + divide on the serial recurrence chain.
    return 0.5 * jnp.tanh(0.5 * z) + 0.5


def _silu(z):
    return z * _sigmoid(z)


def drqn_kernel(w_ref, d_ref, out_ref, *, T, B, H, A):
    r_wih, r_whh, r_wh1, r_wh2, r_b, _ = _slab_offsets(H)

    # ---- loop-invariant weight loads (hoisted once) ----
    wf = w_ref[0:128, 0:H]              # (128, H)  feature weight, K zero-padded
    wih = w_ref[r_wih:r_wih + H, :]     # (H, 128)  input->gates, order i,f,o,g
    whh = w_ref[r_whh:r_whh + H, :]     # (H, 128)  hidden->gates
    bf = w_ref[r_b:r_b + 1, 0:H]        # (1, H)
    bl = w_ref[r_b + 1:r_b + 2, :]      # (1, 128)  combined LSTM bias (b_ih+b_hh)

    # ---- hoisted, h-independent precompute for ALL timesteps ----
    xp = d_ref[0:T * B, :]              # (T*B, 128) time-major x, lane-padded
    feat = _silu(jnp.dot(xp, wf, preferred_element_type=jnp.float32) + bf)
    xg = jnp.dot(feat, wih, preferred_element_type=jnp.float32) + bl   # (T*B, 128)

    h = d_ref[T * B:T * B + B, 0:H]     # (B, H)
    c = d_ref[T * B:T * B + B, H:2 * H]  # (B, H)

    # ---- recurrence: minimal h-dependent chain, fully unrolled (T static) ----
    for t in range(T):
        gates = xg[t * B:(t + 1) * B, :] + jnp.dot(
            h, whh, preferred_element_type=jnp.float32)                # (B, 128)
        sig = _sigmoid(gates[:, 0:3 * H])            # i | f | o, one EUP tanh
        g_g = jnp.tanh(gates[:, 3 * H:4 * H])
        c = sig[:, H:2 * H] * c + sig[:, 0:H] * g_g
        h = sig[:, 2 * H:3 * H] * jnp.tanh(c)

    # ---- fused dueling heads ----
    wh1 = w_ref[r_wh1:r_wh1 + H, 0:2 * H]            # (H, 2H)   [adv_l1 | val_l1]
    wh2 = w_ref[r_wh2:r_wh2 + 2 * H, 0:A + 1]        # (2H, A+1) block-diag l2
    bh1 = w_ref[r_b + 2:r_b + 3, 0:2 * H]            # (1, 2H)
    bh2 = w_ref[r_b + 3:r_b + 4, 0:A + 1]            # (1, A+1)
    hh = _silu(jnp.dot(h, wh1, preferred_element_type=jnp.float32) + bh1)
    out2 = jnp.dot(hh, wh2, preferred_element_type=jnp.float32) + bh2  # (B, A+1)
    adv = out2[:, 0:A]
    val = out2[:, A:A + 1]
    # PyTorch spec: advantage.mean() is a GLOBAL scalar mean (batch + actions).
    q = val + adv - jnp.mean(adv)

    # Single lane-dense (B, 128) store: [ h | c | q | zero-pad ].
    zpad = jnp.zeros((B, 128 - 2 * H - A), jnp.float32)
    out_ref[...] = jnp.concatenate([h, c, q, zpad], axis=1)


# ----------------------------- one-time weight packing -------------------------

def pack_params(params, state_dim, action_dim, hidden_dim):
    """Build the (n_rows, 128) f32 weight slab ONCE at init time (outside jit)."""
    S, H, A = state_dim, hidden_dim, action_dim
    assert S <= 128 and 4 * H <= 128 and 2 * H + A <= 128 and H % 8 == 0
    r_wih, r_whh, r_wh1, r_wh2, r_b, n_rows = _slab_offsets(H)

    W = jnp.zeros((n_rows, 128), jnp.float32)
    W = W.at[0:S, 0:H].set(params["wf"].astype(jnp.float32))
    W = W.at[r_wih:r_wih + H, 0:4 * H].set(params["wih"].astype(jnp.float32))
    W = W.at[r_whh:r_whh + H, 0:4 * H].set(params["whh"].astype(jnp.float32))

    wh1 = jnp.concatenate([params["wa1"], params["wv1"]], axis=1)       # (H, 2H)
    W = W.at[r_wh1:r_wh1 + H, 0:2 * H].set(wh1.astype(jnp.float32))

    wh2 = jnp.zeros((2 * H, A + 1), jnp.float32)
    wh2 = wh2.at[:H, :A].set(params["wa2"]).at[H:, A:].set(params["wv2"])
    W = W.at[r_wh2:r_wh2 + 2 * H, 0:A + 1].set(wh2)

    W = W.at[r_b, 0:H].set(params["bf"][0].astype(jnp.float32))
    W = W.at[r_b + 1, 0:4 * H].set(params["bl"][0].astype(jnp.float32))
    bh1 = jnp.concatenate([params["ba1"], params["bv1"]], axis=1)[0]
    W = W.at[r_b + 2, 0:2 * H].set(bh1.astype(jnp.float32))
    bh2 = jnp.concatenate([params["ba2"], params["bv2"]], axis=1)[0]
    W = W.at[r_b + 3, 0:A + 1].set(bh2.astype(jnp.float32))
    return W


# ----------------------------- forward wrapper ----------------------------------

@functools.partial(jax.jit, static_argnames=("action_dim",))
def dueling_sound_drqn_forward(x, w_slab, hidden_state, cell_state, *, action_dim):
    """x: (B, T, S); hidden/cell: (1, B, H); w_slab: packed weights.

    Returns (q, (h_n, c_n)) matching the PyTorch module.
    """
    B, T, S = x.shape
    H = hidden_state.shape[-1]
    A = action_dim

    # Per-call activation slab (only thing rebuilt every step):
    #   rows 0 .. T*B-1 : x, time-major (row = t*B + b), lane-padded to 128
    #   rows T*B ..     : per-batch row [ h0 | c0 | zeros ]
    xt = jnp.transpose(x, (1, 0, 2)).reshape(T * B, S).astype(jnp.float32)
    x_rows = jnp.pad(xt, ((0, 0), (0, 128 - S)))
    hc = jnp.concatenate([hidden_state[0], cell_state[0]], axis=1).astype(jnp.float32)
    hc_rows = jnp.pad(hc, ((0, 0), (0, 128 - 2 * H)))
    data = jnp.concatenate([x_rows, hc_rows], axis=0)                   # (T*B+B, 128)

    vmem = pl.BlockSpec(memory_space=pltpu.MemorySpace.VMEM)
    out = pl.pallas_call(
        functools.partial(drqn_kernel, T=T, B=B, H=H, A=A),
        out_shape=jax.ShapeDtypeStruct((B, 128), jnp.float32),
        in_specs=[vmem, vmem],
        out_specs=vmem,
    )(w_slab, data)

    q = out[:, 2 * H:2 * H + A]
    h_n = out[:, 0:H][None]
    c_n = out[:, H:2 * H][None]
    return q, (h_n, c_n)


# ------------------------- deterministic parameter init -------------------------

def init_params(key, state_dim, action_dim, hidden_dim):
    S, H, A = state_dim, hidden_dim, action_dim
    keys = jax.random.split(key, 16)

    def uni(k, shape, fan_in):
        bound = 1.0 / jnp.sqrt(jnp.float32(fan_in))
        return jax.random.uniform(k, shape, jnp.float32, -bound, bound)

    # LSTM weights in fused layout: (in, 4H), gate column order i, f, o, g.
    b_ih = uni(keys[4], (1, 4 * H), H)
    b_hh = uni(keys[5], (1, 4 * H), H)
    return {
        "wf":  uni(keys[0], (S, H), S),
        "bf":  uni(keys[1], (1, H), S),
        "wih": uni(keys[2], (H, 4 * H), H),
        "whh": uni(keys[3], (H, 4 * H), H),
        "bl":  b_ih + b_hh,
        "wa1": uni(keys[6], (H, H), H),
        "ba1": uni(keys[7], (1, H), H),
        "wa2": uni(keys[8], (H, A), H),
        "ba2": uni(keys[9], (1, A), H),
        "wv1": uni(keys[10], (H, H), H),
        "bv1": uni(keys[11], (1, H), H),
        "wv2": uni(keys[12], (H, 1), H),
        "bv2": uni(keys[13], (1, 1), H),
    }


# ----------------------------- pure-JAX reference -------------------------------

def reference_forward(x, params, hidden_state, cell_state):
    B, T, S = x.shape
    H = params["wf"].shape[1]
    feat = jax.nn.silu(x.reshape(B * T, S) @ params["wf"] + params["bf"])
    feat = feat.reshape(B, T, H)
    h = hidden_state[0]
    c = cell_state[0]
    for t in range(T):
        gates = feat[:, t, :] @ params["wih"] + h @ params["whh"] + params["bl"]
        i_g = jax.nn.sigmoid(gates[:, 0 * H:1 * H])
        f_g = jax.nn.sigmoid(gates[:, 1 * H:2 * H])
        o_g = jax.nn.sigmoid(gates[:, 2 * H:3 * H])
        g_g = jnp.tanh(gates[:, 3 * H:4 * H])
        c = f_g * c + i_g * g_g
        h = o_g * jnp.tanh(c)
    adv = jax.nn.silu(h @ params["wa1"] + params["ba1"]) @ params["wa2"] + params["ba2"]
    val = jax.nn.silu(h @ params["wv1"] + params["bv1"]) @ params["wv2"] + params["bv2"]
    return val + adv - jnp.mean(adv), (h[None], c[None])


# ----------------------------------- main ----------------------------------------

if __name__ == "__main__":
    B, T = 2, 8
    STATE_DIM, ACTION_DIM, HIDDEN_DIM = 16, 4, 32

    key = jax.random.PRNGKey(0)
    k_x, k_p = jax.random.split(key)

    x = jax.random.normal(k_x, (B, T, STATE_DIM), jnp.float32)
    params = init_params(k_p, STATE_DIM, ACTION_DIM, HIDDEN_DIM)

    # Weight repacking happens exactly once, outside the jitted forward.
    w_slab = pack_params(params, STATE_DIM, ACTION_DIM, HIDDEN_DIM)
    w_slab = jax.block_until_ready(w_slab)

    # init_hidden_states equivalent
    h0 = jnp.zeros((1, B, HIDDEN_DIM), jnp.float32)
    c0 = jnp.zeros((1, B, HIDDEN_DIM), jnp.float32)

    q, (h_n, c_n) = dueling_sound_drqn_forward(
        x, w_slab, h0, c0, action_dim=ACTION_DIM)
    jax.block_until_ready((q, h_n, c_n))

    q_ref, (h_ref, c_ref) = reference_forward(x, params, h0, c0)
    assert q.shape == (B, ACTION_DIM)
    assert h_n.shape == (1, B, HIDDEN_DIM) and c_n.shape == (1, B, HIDDEN_DIM)
    # TODO(synk): tighten to ~1e-5 once matmul precision is pinned on both the
    # Mosaic (kernel) and XLA (reference) sides; kept at 1e-2 to stay robust to
    # the backends' default f32-matmul precision choices.
    assert jnp.allclose(q, q_ref, atol=1e-2, rtol=1e-2)
    assert jnp.allclose(h_n, h_ref, atol=1e-2, rtol=1e-2)
    assert jnp.allclose(c_n, c_ref, atol=1e-2, rtol=1e-2)

    print("KERNEL_OK")
</pallas_src>

<mosaic_0001>
module attributes {stable_mosaic.version = 11 : i64} {
  func.func @drqn_kernel(%arg0: memref<296x128xf32, #tpu.memory_space<vmem>>, %arg1: memref<18x128xf32, #tpu.memory_space<vmem>>, %arg2: memref<2x128xf32, #tpu.memory_space<vmem>>) attributes {dimension_semantics = [], scalar_prefetch = 0 : i64, scratch_operands = 0 : i64, tpu.core_type = #tpu.core_type<tc>} {
    %c0 = arith.constant 0 : index
    %c0_0 = arith.constant 0 : index
    %0 = vector.load %arg0[%c0, %c0_0] : memref<296x128xf32, #tpu.memory_space<vmem>>, vector<128x32xf32>
    %c128 = arith.constant 128 : index
    %c0_1 = arith.constant 0 : index
    %1 = vector.load %arg0[%c128, %c0_1] : memref<296x128xf32, #tpu.memory_space<vmem>>, vector<32x128xf32>
    %c160 = arith.constant 160 : index
    %c0_2 = arith.constant 0 : index
    %2 = vector.load %arg0[%c160, %c0_2] : memref<296x128xf32, #tpu.memory_space<vmem>>, vector<32x128xf32>
    %c288 = arith.constant 288 : index
    %c0_3 = arith.constant 0 : index
    %3 = vector.load %arg0[%c288, %c0_3] : memref<296x128xf32, #tpu.memory_space<vmem>>, vector<1x32xf32>
    %c289 = arith.constant 289 : index
    %c0_4 = arith.constant 0 : index
    %4 = vector.load %arg0[%c289, %c0_4] : memref<296x128xf32, #tpu.memory_space<vmem>>, vector<1x128xf32>
    %c0_5 = arith.constant 0 : index
    %c0_6 = arith.constant 0 : index
    %5 = vector.load %arg1[%c0_5, %c0_6] : memref<18x128xf32, #tpu.memory_space<vmem>>, vector<16x128xf32>
    %cst = arith.constant dense<0.000000e+00> : vector<16x32xf32>
    %6 = tpu.matmul %5, %0, %cst {dimension_numbers = #tpu.dot_dimension_numbers<[1], [0], [0], [1], [0, 0, 1, 1], [], []>} : vector<16x128xf32>, vector<128x32xf32>, vector<16x32xf32> -> vector<16x32xf32>
    %7 = vector.broadcast %3 : vector<1x32xf32> to vector<16x32xf32>
    %8 = arith.addf %6, %7 : vector<16x32xf32>
    %cst_7 = arith.constant 5.000000e-01 : f32
    %9 = vector.broadcast %cst_7 : f32 to vector<16x32xf32>
    %10 = arith.mulf %9, %8 : vector<16x32xf32>
    %11 = math.tanh %10 : vector<16x32xf32>
    %cst_8 = arith.constant 5.000000e-01 : f32
    %12 = vector.broadcast %cst_8 : f32 to vector<16x32xf32>
    %13 = arith.mulf %12, %11 : vector<16x32xf32>
    %cst_9 = arith.constant 5.000000e-01 : f32
    %14 = vector.broadcast %cst_9 : f32 to vector<16x32xf32>
    %15 = arith.addf %13, %14 : vector<16x32xf32>
    %16 = arith.mulf %8, %15 : vector<16x32xf32>
    %cst_10 = arith.constant dense<0.000000e+00> : vector<16x128xf32>
    %17 = tpu.matmul %16, %1, %cst_10 {dimension_numbers = #tpu.dot_dimension_numbers<[1], [0], [0], [1], [0, 0, 1, 1], [], []>} : vector<16x32xf32>, vector<32x128xf32>, vector<16x128xf32> -> vector<16x128xf32>
    %18 = vector.broadcast %4 : vector<1x128xf32> to vector<16x128xf32>
    %19 = arith.addf %17, %18 : vector<16x128xf32>
    %c16 = arith.constant 16 : index
    %c0_11 = arith.constant 0 : index
    %20 = vector.load %arg1[%c16, %c0_11] : memref<18x128xf32, #tpu.memory_space<vmem>>, vector<2x32xf32>
    %c16_12 = arith.constant 16 : index
    %c32 = arith.constant 32 : index
    %21 = vector.load %arg1[%c16_12, %c32] : memref<18x128xf32, #tpu.memory_space<vmem>>, vector<2x32xf32>
    %22 = vector.extract_strided_slice %19 {offsets = [0, 0], sizes = [2, 128], strides = [1, 1]} : vector<16x128xf32> to vector<2x128xf32>
    %cst_13 = arith.constant dense<0.000000e+00> : vector<2x128xf32>
    %23 = tpu.matmul %20, %2, %cst_13 {dimension_numbers = #tpu.dot_dimension_numbers<[1], [0], [0], [1], [0, 0, 1, 1], [], []>} : vector<2x32xf32>, vector<32x128xf32>, vector<2x128xf32> -> vector<2x128xf32>
    %24 = arith.addf %22, %23 : vector<2x128xf32>
    %25 = vector.extract_strided_slice %24 {offsets = [0, 0], sizes = [2, 96], strides = [1, 1]} : vector<2x128xf32> to vector<2x96xf32>
    %cst_14 = arith.constant 5.000000e-01 : f32
    %26 = vector.broadcast %cst_14 : f32 to vector<2x96xf32>
    %27 = arith.mulf %26, %25 : vector<2x96xf32>
    %28 = math.tanh %27 : vector<2x96xf32>
    %cst_15 = arith.constant 5.000000e-01 : f32
    %29 = vector.broadcast %cst_15 : f32 to vector<2x96xf32>
    %30 = arith.mulf %29, %28 : vector<2x96xf32>
    %cst_16 = arith.constant 5.000000e-01 : f32
    %31 = vector.broadcast %cst_16 : f32 to vector<2x96xf32>
    %32 = arith.addf %30, %31 : vector<2x96xf32>
    %33 = vector.extract_strided_slice %24 {offsets = [0, 96], sizes = [2, 32], strides = [1, 1]} : vector<2x128xf32> to vector<2x32xf32>
    %34 = math.tanh %33 : vector<2x32xf32>
    %35 = vector.extract_strided_slice %32 {offsets = [0, 32], sizes = [2, 32], strides = [1, 1]} : vector<2x96xf32> to vector<2x32xf32>
    %36 = arith.mulf %35, %21 : vector<2x32xf32>
    %37 = vector.extract_strided_slice %32 {offsets = [0, 0], sizes = [2, 32], strides = [1, 1]} : vector<2x96xf32> to vector<2x32xf32>
    %38 = arith.mulf %37, %34 : vector<2x32xf32>
    %39 = arith.addf %36, %38 : vector<2x32xf32>
    %40 = vector.extract_strided_slice %32 {offsets = [0, 64], sizes = [2, 32], strides = [1, 1]} : vector<2x96xf32> to vector<2x32xf32>
    %41 = math.tanh %39 : vector<2x32xf32>
    %42 = arith.mulf %40, %41 : vector<2x32xf32>
    %43 = vector.extract_strided_slice %19 {offsets = [2, 0], sizes = [2, 128], strides = [1, 1]} : vector<16x128xf32> to vector<2x128xf32>
    %cst_17 = arith.constant dense<0.000000e+00> : vector<2x128xf32>
    %44 = tpu.matmul %42, %2, %cst_17 {dimension_numbers = #tpu.dot_dimension_numbers<[1], [0], [0], [1], [0, 0, 1, 1], [], []>} : vector<2x32xf32>, vector<32x128xf32>, vector<2x128xf32> -> vector<2x128xf32>
    %45 = arith.addf %43, %44 : vector<2x128xf32>
    %46 = vector.extract_strided_slice %45 {offsets = [0, 0], sizes = [2, 96], strides = [1, 1]} : vector<2x128xf32> to vector<2x96xf32>
    %cst_18 = arith.constant 5.000000e-01 : f32
    %47 = vector.broadcast %cst_18 : f32 to vector<2x96xf32>
    %48 = arith.mulf %47, %46 : vector<2x96xf32>
    %49 = math.tanh %48 : vector<2x96xf32>
    %cst_19 = arith.constant 5.000000e-01 : f32
    %50 = vector.broadcast %cst_19 : f32 to vector<2x96xf32>
    %51 = arith.mulf %50, %49 : vector<2x96xf32>
    %cst_20 = arith.constant 5.000000e-01 : f32
    %52 = vector.broadcast %cst_20 : f32 to vector<2x96xf32>
    %53 = arith.addf %51, %52 : vector<2x96xf32>
    %54 = vector.extract_strided_slice %45 {offsets = [0, 96], sizes = [2, 32], strides = [1, 1]} : vector<2x128xf32> to vector<2x32xf32>
    %55 = math.tanh %54 : vector<2x32xf32>
    %56 = vector.extract_strided_slice %53 {offsets = [0, 32], sizes = [2, 32], strides = [1, 1]} : vector<2x96xf32> to vector<2x32xf32>
    %57 = arith.mulf %56, %39 : vector<2x32xf32>
    %58 = vector.extract_strided_slice %53 {offsets = [0, 0], sizes = [2, 32], strides = [1, 1]} : vector<2x96xf32> to vector<2x32xf32>
    %59 = arith.mulf %58, %55 : vector<2x32xf32>
    %60 = arith.addf %57, %59 : vector<2x32xf32>
    %61 = vector.extract_strided_slice %53 {offsets = [0, 64], sizes = [2, 32], strides = [1, 1]} : vector<2x96xf32> to vector<2x32xf32>
    %62 = math.tanh %60 : vector<2x32xf32>
    %63 = arith.mulf %61, %62 : vector<2x32xf32>
    %64 = vector.extract_strided_slice %19 {offsets = [4, 0], sizes = [2, 128], strides = [1, 1]} : vector<16x128xf32> to vector<2x128xf32>
    %cst_21 = arith.constant dense<0.000000e+00> : vector<2x128xf32>
    %65 = tpu.matmul %63, %2, %cst_21 {dimension_numbers = #tpu.dot_dimension_numbers<[1], [0], [0], [1], [0, 0, 1, 1], [], []>} : vector<2x32xf32>, vector<32x128xf32>, vector<2x128xf32> -> vector<2x128xf32>
    %66 = arith.addf %64, %65 : vector<2x128xf32>
    %67 = vector.extract_strided_slice %66 {offsets = [0, 0], sizes = [2, 96], strides = [1, 1]} : vector<2x128xf32> to vector<2x96xf32>
    %cst_22 = arith.constant 5.000000e-01 : f32
    %68 = vector.broadcast %cst_22 : f32 to vector<2x96xf32>
    %69 = arith.mulf %68, %67 : vector<2x96xf32>
    %70 = math.tanh %69 : vector<2x96xf32>
    %cst_23 = arith.constant 5.000000e-01 : f32
    %71 = vector.broadcast %cst_23 : f32 to vector<2x96xf32>
    %72 = arith.mulf %71, %70 : vector<2x96xf32>
    %cst_24 = arith.constant 5.000000e-01 : f32
    %73 = vector.broadcast %cst_24 : f32 to vector<2x96xf32>
    %74 = arith.addf %72, %73 : vector<2x96xf32>
    %75 = vector.extract_strided_slice %66 {offsets = [0, 96], sizes = [2, 32], strides = [1, 1]} : vector<2x128xf32> to vector<2x32xf32>
    %76 = math.tanh %75 : vector<2x32xf32>
    %77 = vector.extract_strided_slice %74 {offsets = [0, 32], sizes = [2, 32], strides = [1, 1]} : vector<2x96xf32> to vector<2x32xf32>
    %78 = arith.mulf %77, %60 : vector<2x32xf32>
    %79 = vector.extract_strided_slice %74 {offsets = [0, 0], sizes = [2, 32], strides = [1, 1]} : vector<2x96xf32> to vector<2x32xf32>
    %80 = arith.mulf %79, %76 : vector<2x32xf32>
    %81 = arith.addf %78, %80 : vector<2x32xf32>
    %82 = vector.extract_strided_slice %74 {offsets = [0, 64], sizes = [2, 32], strides = [1, 1]} : vector<2x96xf32> to vector<2x32xf32>
    %83 = math.tanh %81 : vector<2x32xf32>
    %84 = arith.mulf %82, %83 : vector<2x32xf32>
    %85 = vector.extract_strided_slice %19 {offsets = [6, 0], sizes = [2, 128], strides = [1, 1]} : vector<16x128xf32> to vector<2x128xf32>
    %cst_25 = arith.constant dense<0.000000e+00> : vector<2x128xf32>
    %86 = tpu.matmul %84, %2, %cst_25 {dimension_numbers = #tpu.dot_dimension_numbers<[1], [0], [0], [1], [0, 0, 1, 1], [], []>} : vector<2x32xf32>, vector<32x128xf32>, vector<2x128xf32> -> vector<2x128xf32>
    %87 = arith.addf %85, %86 : vector<2x128xf32>
    %88 = vector.extract_strided_slice %87 {offsets = [0, 0], sizes = [2, 96], strides = [1, 1]} : vector<2x128xf32> to vector<2x96xf32>
    %cst_26 = arith.constant 5.000000e-01 : f32
    %89 = vector.broadcast %cst_26 : f32 to vector<2x96xf32>
    %90 = arith.mulf %89, %88 : vector<2x96xf32>
    %91 = math.tanh %90 : vector<2x96xf32>
    %cst_27 = arith.constant 5.000000e-01 : f32
    %92 = vector.broadcast %cst_27 : f32 to vector<2x96xf32>
    %93 = arith.mulf %92, %91 : vector<2x96xf32>
    %cst_28 = arith.constant 5.000000e-01 : f32
    %94 = vector.broadcast %cst_28 : f32 to vector<2x96xf32>
    %95 = arith.addf %93, %94 : vector<2x96xf32>
    %96 = vector.extract_strided_slice %87 {offsets = [0, 96], sizes = [2, 32], strides = [1, 1]} : vector<2x128xf32> to vector<2x32xf32>
    %97 = math.tanh %96 : vector<2x32xf32>
    %98 = vector.extract_strided_slice %95 {offsets = [0, 32], sizes = [2, 32], strides = [1, 1]} : vector<2x96xf32> to vector<2x32xf32>
    %99 = arith.mulf %98, %81 : vector<2x32xf32>
    %100 = vector.extract_strided_slice %95 {offsets = [0, 0], sizes = [2, 32], strides = [1, 1]} : vector<2x96xf32> to vector<2x32xf32>
    %101 = arith.mulf %100, %97 : vector<2x32xf32>
    %102 = arith.addf %99, %101 : vector<2x32xf32>
    %103 = vector.extract_strided_slice %95 {offsets = [0, 64], sizes = [2, 32], strides = [1, 1]} : vector<2x96xf32> to vector<2x32xf32>
    %104 = math.tanh %102 : vector<2x32xf32>
    %105 = arith.mulf %103, %104 : vector<2x32xf32>
    %106 = vector.extract_strided_slice %19 {offsets = [8, 0], sizes = [2, 128], strides = [1, 1]} : vector<16x128xf32> to vector<2x128xf32>
    %cst_29 = arith.constant dense<0.000000e+00> : vector<2x128xf32>
    %107 = tpu.matmul %105, %2, %cst_29 {dimension_numbers = #tpu.dot_dimension_numbers<[1], [0], [0], [1], [0, 0, 1, 1], [], []>} : vector<2x32xf32>, vector<32x128xf32>, vector<2x128xf32> -> vector<2x128xf32>
    %108 = arith.addf %106, %107 : vector<2x128xf32>
    %109 = vector.extract_strided_slice %108 {offsets = [0, 0], sizes = [2, 96], strides = [1, 1]} : vector<2x128xf32> to vector<2x96xf32>
    %cst_30 = arith.constant 5.000000e-01 : f32
    %110 = vector.broadcast %cst_30 : f32 to vector<2x96xf32>
    %111 = arith.mulf %110, %109 : vector<2x96xf32>
    %112 = math.tanh %111 : vector<2x96xf32>
    %cst_31 = arith.constant 5.000000e-01 : f32
    %113 = vector.broadcast %cst_31 : f32 to vector<2x96xf32>
    %114 = arith.mulf %113, %112 : vector<2x96xf32>
    %cst_32 = arith.constant 5.000000e-01 : f32
    %115 = vector.broadcast %cst_32 : f32 to vector<2x96xf32>
    %116 = arith.addf %114, %115 : vector<2x96xf32>
    %117 = vector.extract_strided_slice %108 {offsets = [0, 96], sizes = [2, 32], strides = [1, 1]} : vector<2x128xf32> to vector<2x32xf32>
    %118 = math.tanh %117 : vector<2x32xf32>
    %119 = vector.extract_strided_slice %116 {offsets = [0, 32], sizes = [2, 32], strides = [1, 1]} : vector<2x96xf32> to vector<2x32xf32>
    %120 = arith.mulf %119, %102 : vector<2x32xf32>
    %121 = vector.extract_strided_slice %116 {offsets = [0, 0], sizes = [2, 32], strides = [1, 1]} : vector<2x96xf32> to vector<2x32xf32>
    %122 = arith.mulf %121, %118 : vector<2x32xf32>
    %123 = arith.addf %120, %122 : vector<2x32xf32>
    %124 = vector.extract_strided_slice %116 {offsets = [0, 64], sizes = [2, 32], strides = [1, 1]} : vector<2x96xf32> to vector<2x32xf32>
    %125 = math.tanh %123 : vector<2x32xf32>
    %126 = arith.mulf %124, %125 : vector<2x32xf32>
    %127 = vector.extract_strided_slice %19 {offsets = [10, 0], sizes = [2, 128], strides = [1, 1]} : vector<16x128xf32> to vector<2x128xf32>
    %cst_33 = arith.constant dense<0.000000e+00> : vector<2x128xf32>
    %128 = tpu.matmul %126, %2, %cst_33 {dimension_numbers = #tpu.dot_dimension_numbers<[1], [0], [0], [1], [0, 0, 1, 1], [], []>} : vector<2x32xf32>, vector<32x128xf32>, vector<2x128xf32> -> vector<2x128xf32>
    %129 = arith.addf %127, %128 : vector<2x128xf32>
    %130 = vector.extract_strided_slice %129 {offsets = [0, 0], sizes = [2, 96], strides = [1, 1]} : vector<2x128xf32> to vector<2x96xf32>
    %cst_34 = arith.constant 5.000000e-01 : f32
    %131 = vector.broadcast %cst_34 : f32 to vector<2x96xf32>
    %132 = arith.mulf %131, %130 : vector<2x96xf32>
    %133 = math.tanh %132 : vector<2x96xf32>
    %cst_35 = arith.constant 5.000000e-01 : f32
    %134 = vector.broadcast %cst_35 : f32 to vector<2x96xf32>
    %135 = arith.mulf %134, %133 : vector<2x96xf32>
    %cst_36 = arith.constant 5.000000e-01 : f32
    %136 = vector.broadcast %cst_36 : f32 to vector<2x96xf32>
    %137 = arith.addf %135, %136 : vector<2x96xf32>
    %138 = vector.extract_strided_slice %129 {offsets = [0, 96], sizes = [2, 32], strides = [1, 1]} : vector<2x128xf32> to vector<2x32xf32>
    %139 = math.tanh %138 : vector<2x32xf32>
    %140 = vector.extract_strided_slice %137 {offsets = [0, 32], sizes = [2, 32], strides = [1, 1]} : vector<2x96xf32> to vector<2x32xf32>
    %141 = arith.mulf %140, %123 : vector<2x32xf32>
    %142 = vector.extract_strided_slice %137 {offsets = [0, 0], sizes = [2, 32], strides = [1, 1]} : vector<2x96xf32> to vector<2x32xf32>
    %143 = arith.mulf %142, %139 : vector<2x32xf32>
    %144 = arith.addf %141, %143 : vector<2x32xf32>
    %145 = vector.extract_strided_slice %137 {offsets = [0, 64], sizes = [2, 32], strides = [1, 1]} : vector<2x96xf32> to vector<2x32xf32>
    %146 = math.tanh %144 : vector<2x32xf32>
    %147 = arith.mulf %145, %146 : vector<2x32xf32>
    %148 = vector.extract_strided_slice %19 {offsets = [12, 0], sizes = [2, 128], strides = [1, 1]} : vector<16x128xf32> to vector<2x128xf32>
    %cst_37 = arith.constant dense<0.000000e+00> : vector<2x128xf32>
    %149 = tpu.matmul %147, %2, %cst_37 {dimension_numbers = #tpu.dot_dimension_numbers<[1], [0], [0], [1], [0, 0, 1, 1], [], []>} : vector<2x32xf32>, vector<32x128xf32>, vector<2x128xf32> -> vector<2x128xf32>
    %150 = arith.addf %148, %149 : vector<2x128xf32>
    %151 = vector.extract_strided_slice %150 {offsets = [0, 0], sizes = [2, 96], strides = [1, 1]} : vector<2x128xf32> to vector<2x96xf32>
    %cst_38 = arith.constant 5.000000e-01 : f32
    %152 = vector.broadcast %cst_38 : f32 to vector<2x96xf32>
    %153 = arith.mulf %152, %151 : vector<2x96xf32>
    %154 = math.tanh %153 : vector<2x96xf32>
    %cst_39 = arith.constant 5.000000e-01 : f32
    %155 = vector.broadcast %cst_39 : f32 to vector<2x96xf32>
    %156 = arith.mulf %155, %154 : vector<2x96xf32>
    %cst_40 = arith.constant 5.000000e-01 : f32
    %157 = vector.broadcast %cst_40 : f32 to vector<2x96xf32>
    %158 = arith.addf %156, %157 : vector<2x96xf32>
    %159 = vector.extract_strided_slice %150 {offsets = [0, 96], sizes = [2, 32], strides = [1, 1]} : vector<2x128xf32> to vector<2x32xf32>
    %160 = math.tanh %159 : vector<2x32xf32>
    %161 = vector.extract_strided_slice %158 {offsets = [0, 32], sizes = [2, 32], strides = [1, 1]} : vector<2x96xf32> to vector<2x32xf32>
    %162 = arith.mulf %161, %144 : vector<2x32xf32>
    %163 = vector.extract_strided_slice %158 {offsets = [0, 0], sizes = [2, 32], strides = [1, 1]} : vector<2x96xf32> to vector<2x32xf32>
    %164 = arith.mulf %163, %160 : vector<2x32xf32>
    %165 = arith.addf %162, %164 : vector<2x32xf32>
    %166 = vector.extract_strided_slice %158 {offsets = [0, 64], sizes = [2, 32], strides = [1, 1]} : vector<2x96xf32> to vector<2x32xf32>
    %167 = math.tanh %165 : vector<2x32xf32>
    %168 = arith.mulf %166, %167 : vector<2x32xf32>
    %169 = vector.extract_strided_slice %19 {offsets = [14, 0], sizes = [2, 128], strides = [1, 1]} : vector<16x128xf32> to vector<2x128xf32>
    %cst_41 = arith.constant dense<0.000000e+00> : vector<2x128xf32>
    %170 = tpu.matmul %168, %2, %cst_41 {dimension_numbers = #tpu.dot_dimension_numbers<[1], [0], [0], [1], [0, 0, 1, 1], [], []>} : vector<2x32xf32>, vector<32x128xf32>, vector<2x128xf32> -> vector<2x128xf32>
    %171 = arith.addf %169, %170 : vector<2x128xf32>
    %172 = vector.extract_strided_slice %171 {offsets = [0, 0], sizes = [2, 96], strides = [1, 1]} : vector<2x128xf32> to vector<2x96xf32>
    %cst_42 = arith.constant 5.000000e-01 : f32
    %173 = vector.broadcast %cst_42 : f32 to vector<2x96xf32>
    %174 = arith.mulf %173, %172 : vector<2x96xf32>
    %175 = math.tanh %174 : vector<2x96xf32>
    %cst_43 = arith.constant 5.000000e-01 : f32
    %176 = vector.broadcast %cst_43 : f32 to vector<2x96xf32>
    %177 = arith.mulf %176, %175 : vector<2x96xf32>
    %cst_44 = arith.constant 5.000000e-01 : f32
    %178 = vector.broadcast %cst_44 : f32 to vector<2x96xf32>
    %179 = arith.addf %177, %178 : vector<2x96xf32>
    %180 = vector.extract_strided_slice %171 {offsets = [0, 96], sizes = [2, 32], strides = [1, 1]} : vector<2x128xf32> to vector<2x32xf32>
    %181 = math.tanh %180 : vector<2x32xf32>
    %182 = vector.extract_strided_slice %179 {offsets = [0, 32], sizes = [2, 32], strides = [1, 1]} : vector<2x96xf32> to vector<2x32xf32>
    %183 = arith.mulf %182, %165 : vector<2x32xf32>
    %184 = vector.extract_strided_slice %179 {offsets = [0, 0], sizes = [2, 32], strides = [1, 1]} : vector<2x96xf32> to vector<2x32xf32>
    %185 = arith.mulf %184, %181 : vector<2x32xf32>
    %186 = arith.addf %183, %185 : vector<2x32xf32>
    %187 = vector.extract_strided_slice %179 {offsets = [0, 64], sizes = [2, 32], strides = [1, 1]} : vector<2x96xf32> to vector<2x32xf32>
    %188 = math.tanh %186 : vector<2x32xf32>
    %189 = arith.mulf %187, %188 : vector<2x32xf32>
    %c192 = arith.constant 192 : index
    %c0_45 = arith.constant 0 : index
    %190 = vector.load %arg0[%c192, %c0_45] : memref<296x128xf32, #tpu.memory_space<vmem>>, vector<32x64xf32>
    %c224 = arith.constant 224 : index
    %c0_46 = arith.constant 0 : index
    %191 = vector.load %arg0[%c224, %c0_46] : memref<296x128xf32, #tpu.memory_space<vmem>>, vector<64x5xf32>
    %c290 = arith.constant 290 : index
    %c0_47 = arith.constant 0 : index
    %192 = vector.load %arg0[%c290, %c0_47] : memref<296x128xf32, #tpu.memory_space<vmem>>, vector<1x64xf32>
    %c291 = arith.constant 291 : index
    %c0_48 = arith.constant 0 : index
    %193 = vector.load %arg0[%c291, %c0_48] : memref<296x128xf32, #tpu.memory_space<vmem>>, vector<1x5xf32>
    %cst_49 = arith.constant dense<0.000000e+00> : vector<2x64xf32>
    %194 = tpu.matmul %189, %190, %cst_49 {dimension_numbers = #tpu.dot_dimension_numbers<[1], [0], [0], [1], [0, 0, 1, 1], [], []>} : vector<2x32xf32>, vector<32x64xf32>, vector<2x64xf32> -> vector<2x64xf32>
    %195 = vector.broadcast %192 : vector<1x64xf32> to vector<2x64xf32>
    %196 = arith.addf %194, %195 : vector<2x64xf32>
    %cst_50 = arith.constant 5.000000e-01 : f32
    %197 = vector.broadcast %cst_50 : f32 to vector<2x64xf32>
    %198 = arith.mulf %197, %196 : vector<2x64xf32>
    %199 = math.tanh %198 : vector<2x64xf32>
    %cst_51 = arith.constant 5.000000e-01 : f32
    %200 = vector.broadcast %cst_51 : f32 to vector<2x64xf32>
    %201 = arith.mulf %200, %199 : vector<2x64xf32>
    %cst_52 = arith.constant 5.000000e-01 : f32
    %202 = vector.broadcast %cst_52 : f32 to vector<2x64xf32>
    %203 = arith.addf %201, %202 : vector<2x64xf32>
    %204 = arith.mulf %196, %203 : vector<2x64xf32>
    %cst_53 = arith.constant dense<0.000000e+00> : vector<2x5xf32>
    %205 = tpu.matmul %204, %191, %cst_53 {dimension_numbers = #tpu.dot_dimension_numbers<[1], [0], [0], [1], [0, 0, 1, 1], [], []>} : vector<2x64xf32>, vector<64x5xf32>, vector<2x5xf32> -> vector<2x5xf32>
    %206 = vector.broadcast %193 : vector<1x5xf32> to vector<2x5xf32>
    %207 = arith.addf %205, %206 : vector<2x5xf32>
    %208 = vector.extract_strided_slice %207 {offsets = [0, 0], sizes = [2, 4], strides = [1, 1]} : vector<2x5xf32> to vector<2x4xf32>
    %209 = vector.extract_strided_slice %207 {offsets = [0, 4], sizes = [2, 1], strides = [1, 1]} : vector<2x5xf32> to vector<2x1xf32>
    %210 = vector.broadcast %209 : vector<2x1xf32> to vector<2x4xf32>
    %211 = arith.addf %210, %208 : vector<2x4xf32>
    %212 = vector.shape_cast %208 : vector<2x4xf32> to vector<1x2x4xf32>
    %cst_54 = arith.constant dense<0.000000e+00> : vector<1xf32>
    %213 = vector.multi_reduction <add>, %212, %cst_54 [1, 2] : vector<1x2x4xf32> to vector<1xf32>
    %214 = vector.shape_cast %213 : vector<1xf32> to vector<1x1x1xf32>
    %215 = vector.extract %214[0, 0, 0] : f32 from vector<1x1x1xf32>
    %cst_55 = arith.constant 8.000000e+00 : f32
    %216 = arith.divf %215, %cst_55 : f32
    %217 = vector.broadcast %216 : f32 to vector<2x4xf32>
    %218 = arith.subf %211, %217 : vector<2x4xf32>
    %cst_56 = arith.constant 0.000000e+00 : f32
    %219 = vector.broadcast %cst_56 : f32 to vector<2x60xf32>
    %220 = tpu.concatenate %189, %186, %218, %219 in 1 : vector<2x32xf32>, vector<2x32xf32>, vector<2x4xf32>, vector<2x60xf32> -> vector<2x128xf32>
    %c0_57 = arith.constant 0 : index
    %c0_58 = arith.constant 0 : index
    %221 = vector.load %arg2[%c0_57, %c0_58] : memref<2x128xf32, #tpu.memory_space<vmem>>, vector<2x128xf32>
    tpu.vector_store %arg2[%c0_57, %c0_58], %220 {strides = array<i32>} : memref<2x128xf32, #tpu.memory_space<vmem>>, vector<2x128xf32>,
    return
  }
}

</mosaic_0001>

<bundles_post_ra>
// kernel: dueling_sound_drqn_forward.1
= control target key start
LH: loop header
LB: loop body
LE: loop exit
PB: predicated region body
PF: predicated region fallthrough
CT: control target
= control target key end

     0   :  { %7 = vsyncpa [#allocation3], 0  ;;  %s774_s12 = smov [#allocation2]   ;;  %s775_s14 = smov 128   ;;  %s923_s0 = inlined_call_operand.hbm [shape: f32[296,128], index: 0, kind: input, shape index: {}]   ;;  %s924_s1 = inlined_call_operand.vmem [shape: f32[18,128], index: 1, kind: input, shape index: {}]   ;;  %s925_s2 = inlined_call_operand.vmem [shape: f32[2,128], index: 2, kind: output, shape index: {}]  }
   0x1   :  { %s12_s11 = sshll.u32 %s923_s0, 4  ;;  %s14_s13 = sshll.u32 %s774_s12, 4  ;;  %s13_s11 = int_to_ptr.hbm [resolvable:$true] %s12_s11  ;;  %s15_s13 = int_to_ptr.vmem [resolvable:$true] %s14_s13 }
   0x2   :  { %s776_s15 = smov 8  }
   0x3   :  { %20 = dma.hbm_to_vmem [thread:$0]  %s13_s11, 4736, %s15_s13, [#allocation3], %s775_s14, %s775_s14, %s776_s15  }
   0x4   :  { %772 = dma.done.wait [#allocation3], 4736  }
   0x5   :  { %773 = vsyncadd [#allocation3], 4294962560  ;;  %v42_v0 = vld [vmem:[#allocation2 + $0x78] sm:$0xff]  ;;  %v41_v1 = vld [vmem:[#allocation2 + $0x70] sm:$0xff]  ;;  %vm90_vm0 = vcmask 261120   ;;  %s777_s19 = smov 32  }
   0x6   :  { %56 = vmatpush.msra.mxu0 %v42_v0  ;;  %v40_v2 = vld [vmem:[#allocation2 + $0x68] sm:$0xff]  ;;  %v39_v3 = vld [vmem:[#allocation2 + $0x60] sm:$0xff]  ;;  %v38_v4 = vld [vmem:[#allocation2 + $0x58] sm:$0xff]  ;;  %s778_s20 = smov 64   ;;  %vm594_vm1 = vcmask 523264   ;;  %vm624_vm2 = vcmask 25600  }
   0x7   :  { %v37_v5 = vld [vmem:[#allocation2 + $0x50] sm:$0xff]  ;;  %v36_v6 = vld [vmem:[#allocation2 + $0x48] sm:$0xff]  ;;  %v35_v7 = vld [vmem:[#allocation2 + $0x40] sm:$0xff]  ;;  %vm656_vm4 = vcmask 556032  }
   0x8   :  { %57 = vmatpush.msra.mxu0 %v41_v1  ;;  %v34_v8 = vld [vmem:[#allocation2 + $0x38] sm:$0xff]  ;;  %v33_v9 = vld [vmem:[#allocation2 + $0x30] sm:$0xff]  ;;  %v32_v10 = vld [vmem:[#allocation2 + $0x28] sm:$0xff] }
   0x9   :  { %v31_v11 = vld [vmem:[#allocation2 + $0x20] sm:$0xff]  ;;  %v30_v12 = vld [vmem:[#allocation2 + $0x18] sm:$0xff]  ;;  %v29_v13 = vld [vmem:[#allocation2 + $0x10] sm:$0xff] }
   0xa   :  { %58 = vmatpush.msra.mxu0 %v40_v2  ;;  %v28_v14 = vld [vmem:[#allocation2 + $0x8] sm:$0xff]  ;;  %v27_v15 = vld [vmem:[#allocation2] sm:$0xff]  ;;  %v802_v17 = vld [vmem:[#allocation2 + $0xb8] sm:$0xff] }
   0xb   :  { %v53_v16 = vld [vmem:[%s924_s1] sm:$0xff]  ;;  %136 = vmatpush.msra.mxu2 %v802_v17  ;;  %184 = vmatpush.msra.mxu3 %v802_v17  ;;  %v806_v18 = vld [vmem:[#allocation2 + $0xb0] sm:$0xff]  ;;  %v46_v19 = vld [vmem:[#allocation2 + $0x98] sm:$0xff] }
   0xc   :  { %59 = vmatpush.msra.mxu0 %v39_v3  ;;  %v810_v20 = vld [vmem:[#allocation2 + $0xa8] sm:$0xff]  ;;  %109 = vmatpush.msra.mxu1 %v46_v19  ;;  %v45_v21 = vld [vmem:[#allocation2 + $0x90] sm:$0xff]  ;;  %v813_v22 = vld [vmem:[#allocation2 + $0xa0] sm:$0xff] }
   0xd   :  { %137 = vmatpush.msra.mxu2 %v806_v18  ;;  %185 = vmatpush.msra.mxu3 %v806_v18  ;;  %v120_v23 = vld [vmem:[%s924_s1 + $0x10] sm:$0x3]  ;;  %v44_v24 = vld [vmem:[#allocation2 + $0x88] sm:$0xff]  ;;  %v43_v25 = vld [vmem:[#allocation2 + $0x80] sm:$0xff] }
   0xe   :  { %60 = vmatpush.msra.mxu0 %v38_v4  ;;  %110 = vmatpush.msra.mxu1 %v45_v21  ;;  %v837_v26 = vld [vmem:[#allocation2 + $0x120] ss:$0 sm:$0xff]  ;;  %v846_v34 = vld [vmem:[#allocation2 + $0x121] ss:$0 sm:$0xff] }
   0xf   :  { %138 = vmatpush.msra.mxu2 %v810_v20  ;;  %186 = vmatpush.msra.mxu3 %v810_v20 }
  0x10   :  { %61 = vmatpush.msra.mxu0 %v37_v5  ;;  %111 = vmatpush.msra.mxu1 %v44_v24 }
  0x11   :  { %139 = vmatpush.msra.mxu2 %v813_v22  ;;  %187 = vmatpush.msra.mxu3 %v813_v22 }
  0x12   :  { %62 = vmatpush.msra.mxu0 %v36_v6  ;;  %666 = vmatmul.msk.f32.vlgmr.msra.gmra.mxu2 %vm90_vm0, %v120_v23 }
  0x13   :  { %239 = vmatpush.msrb.mxu2 %v802_v17  ;;  %294 = vmatpush.msrb.mxu3 %v802_v17 }
  0x14   :  { %63 = vmatpush.msra.mxu0 %v35_v7  ;;  %112 = vmatpush.msra.mxu1 %v43_v25 }
  0x15   :  { %240 = vmatpush.msrb.mxu2 %v806_v18  ;;  %295 = vmatpush.msrb.mxu3 %v806_v18 }
  0x16   :  { %64 = vmatpush.msra.mxu0 %v34_v8  ;;  %349 = vmatpush.msrb.mxu1 %v802_v17 }
  0x17   :  { %241 = vmatpush.msrb.mxu2 %v810_v20  ;;  %296 = vmatpush.msrb.mxu3 %v810_v20 }
  0x18   :  { %65 = vmatpush.msra.mxu0 %v33_v9  ;;  %350 = vmatpush.msrb.mxu1 %v806_v18 }
  0x19   :  { %242 = vmatpush.msrb.mxu2 %v813_v22  ;;  %297 = vmatpush.msrb.mxu3 %v813_v22 }
  0x1a   :  { %66 = vmatpush.msra.mxu0 %v32_v10  ;;  %351 = vmatpush.msrb.mxu1 %v810_v20 }
  0x1b   :  { %400 = vmatpush.msra.mxu2 %v802_v17 }
  0x1c   :  { %67 = vmatpush.msra.mxu0 %v31_v11  ;;  %352 = vmatpush.msrb.mxu1 %v813_v22 }
  0x1d   :  { %401 = vmatpush.msra.mxu2 %v806_v18 }
  0x1e   :  { %68 = vmatpush.msra.mxu0 %v30_v12 }
  0x1f   :  { %402 = vmatpush.msra.mxu2 %v810_v20 }
  0x20   :  { %69 = vmatpush.msra.mxu0 %v29_v13 }
  0x21   :  { %403 = vmatpush.msra.mxu2 %v813_v22 }
  0x22   :  { %70 = vmatpush.msra.mxu0 %v28_v14 }
  0x24   :  { %71 = vmatpush.msra.mxu0 %v27_v15 }
  0x25   :  { %72 = vmatmul.f32.vlgmr.msra.gmra.mxu0 %v53_v16 }
  0x95   :  { %v141_v36 = vpop.f32.mrf.mxu2 }
  0xa2   :  { %v73_v27 = vpop.f32.mrf.mxu0 }
  0xa3   :  { %v74_v28 = vadd.f32 %v837_v26, %v73_v27 }
  0xa5   :  { %v79_v29 = vmul.f32 0.5, %v74_v28 }
  0xa7   :  { %692 = vtanh.f32 %v79_v29 }
  0xad   :  { %v693_v30 = vpop.eup %692 }
  0xae   :  { %v83_v31 = vmul.f32 0.5, %v693_v30 }
  0xb0   :  { %v85_v32 = vadd.f32 0.5, %v83_v31 }
  0xb2   :  { %v87_v33 = vmul.f32 %v85_v32, %v74_v28 }
  0xb4   :  { %664 = vmatmul.msk.f32.vlgmr.msra.gmra.mxu1 %vm90_vm0, %v87_v33 }
  0xb5   :  { %510 = vmatpush.msra.mxu1 %v802_v17 }
  0xb7   :  { %511 = vmatpush.msra.mxu1 %v806_v18 }
  0xb9   :  { %512 = vmatpush.msra.mxu1 %v810_v20 }
  0xbb   :  { %513 = vmatpush.msra.mxu1 %v813_v22 }
 0x131   :  { %v114_v35 = vpop.f32.mrf.mxu1 }
 0x132   :  { %v849_v37 = vadd.f32 %v846_v34, %v114_v35 }
 0x134   :  { %v144_v38 = vadd.f32 %v141_v36, %v849_v37 }
 0x136   :  { %694 = vtanh.f32 %v144_v38  ;;  %v145_v40 = vmul.f32 0.5, %v144_v38 }
 0x138   :  { %696 = vtanh.f32 %v145_v40  ;;  %v54_v40 = vld [vmem:[%s924_s1 + $0x8] sm:$0xff] }
 0x139   :  { %75 = vmatmul.f32.gmra.mxu0 %v54_v40 }
 0x13c   :  { %v695_v39 = vpop.eup %694 }
 0x13d   :  { %152 = vrot.lane.b32.xlu0 %v695_v39, %s777_s19 }
 0x13e   :  { %v697_v41 = vpop.eup %696 }
 0x13f   :  { %v147_v42 = vmul.f32 0.5, %v697_v41 }
 0x141   :  { %v148_v43 = vadd.f32 0.5, %v147_v42 }
 0x143   :  { %v150_v46 = vmul.f32 %v148_v43, %v120_v23 }
 0x1af   :  { %v153_v44 = vpop.permute.xlu0 %152 }
 0x1b0   :  { %v155_v45 = vmul.f32 %v153_v44, %v148_v43 }
 0x1b2   :  { %157 = vrot.lane.b32.xlu0 %v155_v45, %s777_s19 }
 0x224   :  { %v158_v47 = vpop.permute.xlu0 %157 }
 0x225   :  { %v160_v48 = vadd.f32 %v158_v47, %v150_v46 }
 0x227   :  { %698 = vtanh.f32 %v160_v48  ;;  %v202_v63 = vrot.slane %v160_v48, 6  ;;  %v76_v48 = vpop.f32.mrf.mxu0 }
 0x22d   :  { %v699_v49 = vpop.eup %698 }
 0x22e   :  { %163 = vrot.lane.b32.xlu1 %v699_v49, %s777_s19  ;;  %v77_v49 = vadd.f32 %v837_v26, %v76_v48 }
 0x2a0   :  { %v164_v50 = vpop.permute.xlu1 %163 }
 0x2a1   :  { %v166_v51 = vmul.f32 %v164_v50, %v148_v43  ;;  %v80_v50 = vmul.f32 0.5, %v77_v49 }
 0x2a3   :  { %168 = vrot.lane.b32.xlu1 %v166_v51, %s778_s20 }
 0x315   :  { %v169_v52 = vpop.permute.xlu1 %168 }
 0x316   :  { %667 = vmatmul.msk.f32.vlgmr.msra.gmra.mxu3 %vm90_vm0, %v169_v52 }
 0x317   :  { %455 = vmatpush.msra.mxu3 %v802_v17 }
 0x319   :  { %456 = vmatpush.msra.mxu3 %v806_v18 }
 0x31b   :  { %457 = vmatpush.msra.mxu3 %v810_v20 }
 0x31d   :  { %458 = vmatpush.msra.mxu3 %v813_v22 }
 0x399   :  { %v189_v53 = vpop.f32.mrf.mxu3 }
 0x39a   :  { %v193_v54 = vrot.slane %v189_v53, 6 }
 0x39c   :  { %v195_v55 = vadd.f32 %v193_v54, %v849_v37 }
 0x39e   :  { %700 = vtanh.f32 %v195_v55  ;;  %v196_v57 = vmul.f32 0.5, %v195_v55 }
 0x3a0   :  { %702 = vtanh.f32 %v196_v57 }
 0x3a4   :  { %v701_v56 = vpop.eup %700 }
 0x3a5   :  { %206 = vrot.lane.b32.xlu2 %v701_v56, %s777_s19 }
 0x3a6   :  { %v703_v58 = vpop.eup %702 }
 0x3a7   :  { %v198_v59 = vmul.f32 0.5, %v703_v58 }
 0x3a9   :  { %v199_v60 = vadd.f32 0.5, %v198_v59 }
 0x3ab   :  { %v204_v0 = vmul.f32 %v202_v63, %v199_v60 }
 0x3ff   :  { %v207_v61 = vpop.permute.xlu2 %206 }
 0x400   :  { %v209_v62 = vmul.f32 %v207_v61, %v199_v60 }
 0x402   :  { %211 = vrot.lane.b32.xlu2 %v209_v62, %s777_s19 }
 0x45c   :  { %v212_v1 = vpop.permute.xlu2 %211 }
 0x45d   :  { %v214_v2 = vadd.f32 %v212_v1, %v204_v0 }
 0x45f   :  { %704 = vtanh.f32 %v214_v2  ;;  %v257_v18 = vrot.slane %v214_v2, 6 }
 0x465   :  { %v705_v3 = vpop.eup %704 }
 0x466   :  { %217 = vrot.lane.b32.xlu0 %v705_v3, %s777_s19 }
 0x4d8   :  { %v218_v4 = vpop.permute.xlu0 %217 }
 0x4d9   :  { %v220_v5 = vmul.f32 %v218_v4, %v199_v60 }
 0x4db   :  { %v222_v6 = vrot.slane %v220_v5, 2 }
 0x4dd   :  { %223 = vrot.lane.b32.xlu1 %v222_v6, %s778_s20 }
 0x54f   :  { %v224_v7 = vpop.permute.xlu1 %223 }
 0x550   :  { %668 = vmatmul.msk.f32.vlgmr.msrb.gmra.mxu2 %vm90_vm0, %v224_v7 }
 0x5d3   :  { %v244_v8 = vpop.f32.mrf.mxu2 }
 0x5d4   :  { %v248_v9 = vrot.slane %v244_v8, 4 }
 0x5d6   :  { %v250_v10 = vadd.f32 %v248_v9, %v849_v37 }
 0x5d8   :  { %706 = vtanh.f32 %v250_v10  ;;  %v251_v12 = vmul.f32 0.5, %v250_v10 }
 0x5da   :  { %708 = vtanh.f32 %v251_v12 }
 0x5de   :  { %v707_v11 = vpop.eup %706 }
 0x5df   :  { %261 = vrot.lane.b32.xlu2 %v707_v11, %s777_s19 }
 0x5e0   :  { %v709_v13 = vpop.eup %708 }
 0x5e1   :  { %v253_v14 = vmul.f32 0.5, %v709_v13 }
 0x5e3   :  { %v254_v15 = vadd.f32 0.5, %v253_v14 }
 0x5e5   :  { %v259_v19 = vmul.f32 %v257_v18, %v254_v15 }
 0x639   :  { %v262_v16 = vpop.permute.xlu2 %261 }
 0x63a   :  { %v264_v17 = vmul.f32 %v262_v16, %v254_v15 }
 0x63c   :  { %266 = vrot.lane.b32.xlu0 %v264_v17, %s777_s19 }
 0x6ae   :  { %v267_v20 = vpop.permute.xlu0 %266 }
 0x6af   :  { %v269_v21 = vadd.f32 %v267_v20, %v259_v19 }
 0x6b1   :  { %710 = vtanh.f32 %v269_v21  ;;  %v312_v41 = vrot.slane %v269_v21, 6 }
 0x6b7   :  { %v711_v22 = vpop.eup %710 }
 0x6b8   :  { %272 = vrot.lane.b32.xlu1 %v711_v22, %s777_s19 }
 0x72a   :  { %v273_v23 = vpop.permute.xlu1 %272 }
 0x72b   :  { %v275_v24 = vmul.f32 %v273_v23, %v254_v15 }
 0x72d   :  { %v277_v25 = vrot.slane %v275_v24, 4 }
 0x72f   :  { %278 = vrot.lane.b32.xlu2 %v277_v25, %s778_s20 }
 0x789   :  { %v279_v27 = vpop.permute.xlu2 %278 }
 0x78a   :  { %669 = vmatmul.msk.f32.vlgmr.msrb.gmra.mxu3 %vm90_vm0, %v279_v27 }
 0x80d   :  { %v299_v28 = vpop.f32.mrf.mxu3 }
 0x80e   :  { %v303_v29 = vrot.slane %v299_v28, 2 }
 0x810   :  { %v305_v30 = vadd.f32 %v303_v29, %v849_v37 }
 0x812   :  { %712 = vtanh.f32 %v305_v30  ;;  %v306_v32 = vmul.f32 0.5, %v305_v30 }
 0x814   :  { %714 = vtanh.f32 %v306_v32 }
 0x818   :  { %v713_v31 = vpop.eup %712 }
 0x819   :  { %316 = vrot.lane.b32.xlu0 %v713_v31, %s777_s19 }
 0x81a   :  { %v715_v33 = vpop.eup %714 }
 0x81b   :  { %v308_v35 = vmul.f32 0.5, %v715_v33 }
 0x81d   :  { %v309_v36 = vadd.f32 0.5, %v308_v35 }
 0x81f   :  { %v314_v37 = vmul.f32 %v312_v41, %v309_v36 }
 0x88b   :  { %v317_v38 = vpop.permute.xlu0 %316 }
 0x88c   :  { %v319_v39 = vmul.f32 %v317_v38, %v309_v36 }
 0x88e   :  { %321 = vrot.lane.b32.xlu1 %v319_v39, %s777_s19 }
 0x900   :  { %v322_v42 = vpop.permute.xlu1 %321 }
 0x901   :  { %v324_v43 = vadd.f32 %v322_v42, %v314_v37 }
 0x903   :  { %716 = vtanh.f32 %v324_v43  ;;  %v364_v2 = vrot.slane %v324_v43, 6 }
 0x904   :  { %718 = vtanh.f32 %v80_v50 }
 0x909   :  { %v717_v44 = vpop.eup %716 }
 0x90a   :  { %327 = vrot.lane.b32.xlu2 %v717_v44, %s777_s19  ;;  %v719_v51 = vpop.eup %718 }
 0x90b   :  { %v84_v52 = vmul.f32 0.5, %v719_v51 }
 0x90d   :  { %v86_v53 = vadd.f32 0.5, %v84_v52 }
 0x90f   :  { %v88_v54 = vmul.f32 %v86_v53, %v77_v49 }
 0x911   :  { %665 = vmatmul.msk.f32.gmra.mxu1 %vm90_vm0, %v88_v54 }
 0x964   :  { %v328_v45 = vpop.permute.xlu2 %327 }
 0x965   :  { %v330_v46 = vmul.f32 %v328_v45, %v309_v36 }
 0x967   :  { %v332_v47 = vrot.slane %v330_v46, 6 }
 0x969   :  { %333 = vrot.lane.b32.xlu0 %v332_v47, %s778_s20 }
 0x98e   :  { %v117_v56 = vpop.f32.mrf.mxu1 }
 0x98f   :  { %v885_v57 = vadd.f32 %v846_v34, %v117_v56 }
 0x9db   :  { %v334_v55 = vpop.permute.xlu0 %333 }
 0x9dc   :  { %670 = vmatmul.msk.f32.vlgmr.msrb.gmra.mxu1 %vm90_vm0, %v334_v55 }
 0xa59   :  { %v354_v58 = vpop.f32.mrf.mxu1 }
 0xa5a   :  { %v357_v59 = vadd.f32 %v354_v58, %v885_v57 }
 0xa5c   :  { %720 = vtanh.f32 %v357_v59  ;;  %v358_v60 = vmul.f32 0.5, %v357_v59 }
 0xa5e   :  { %722 = vtanh.f32 %v358_v60 }
 0xa62   :  { %v721_v26 = vpop.eup %720 }
 0xa63   :  { %368 = vrot.lane.b32.xlu1 %v721_v26, %s777_s19 }
 0xa64   :  { %v723_v61 = vpop.eup %722 }
 0xa65   :  { %v360_v62 = vmul.f32 0.5, %v723_v61 }
 0xa67   :  { %v361_v63 = vadd.f32 0.5, %v360_v62 }
 0xa69   :  { %v366_v3 = vmul.f32 %v364_v2, %v361_v63  ;;  %v547_v2 = vld [vmem:[#allocation2 + $0xc0] sm:$0xff] }
 0xad5   :  { %v369_v0 = vpop.permute.xlu1 %368 }
 0xad6   :  { %v371_v1 = vmul.f32 %v369_v0, %v361_v63  ;;  %v549_v0 = vld [vmem:[#allocation2 + $0xd0] sm:$0xff] }
 0xad8   :  { %373 = vrot.lane.b32.xlu2 %v371_v1, %s777_s19  ;;  %v548_v1 = vld [vmem:[#allocation2 + $0xc8] sm:$0xff] }
 0xb32   :  { %v374_v34 = vpop.permute.xlu2 %373 }
 0xb33   :  { %v376_v4 = vadd.f32 %v374_v34, %v366_v3 }
 0xb35   :  { %724 = vtanh.f32 %v376_v4  ;;  %v418_v19 = vrot.slane %v376_v4, 6 }
 0xb3b   :  { %v725_v5 = vpop.eup %724 }
 0xb3c   :  { %379 = vrot.lane.b32.xlu0 %v725_v5, %s777_s19 }
 0xbae   :  { %v380_v6 = vpop.permute.xlu0 %379 }
 0xbaf   :  { %v382_v7 = vmul.f32 %v380_v6, %v361_v63  ;;  %v550_v63 = vld [vmem:[#allocation2 + $0xd8] sm:$0xff] }
 0xbb0   :  { %580 = vmatpush.msrb.mxu2 %v550_v63  ;;  %v558_v6 = vld [vmem:[#allocation2 + $0x118] sm:$0xff] }
 0xbb1   :  { %384 = vrot.lane.b32.xlu1 %v382_v7, %s778_s20  ;;  %606 = vmatpush.msrb.mxu3 %v558_v6  ;;  %v557_v7 = vld [vmem:[#allocation2 + $0x110] sm:$0xff] }
 0xbb2   :  { %581 = vmatpush.msrb.mxu2 %v549_v0 }
 0xbb3   :  { %607 = vmatpush.msrb.mxu3 %v557_v7 }
 0xbb4   :  { %582 = vmatpush.msrb.mxu2 %v548_v1 }
 0xbb6   :  { %583 = vmatpush.msrb.mxu2 %v547_v2 }
 0xc23   :  { %v385_v8 = vpop.permute.xlu1 %384 }
 0xc24   :  { %671 = vmatmul.msk.f32.vlgmr.msra.gmra.mxu2 %vm90_vm0, %v385_v8  ;;  %v556_v8 = vld [vmem:[#allocation2 + $0x108] sm:$0xff] }
 0xc25   :  { %608 = vmatpush.msrb.mxu3 %v556_v8 }
 0xca7   :  { %v405_v9 = vpop.f32.mrf.mxu2 }
 0xca8   :  { %v409_v10 = vrot.slane %v405_v9, 6  ;;  %v555_v9 = vld [vmem:[#allocation2 + $0x100] sm:$0xff] }
 0xca9   :  { %609 = vmatpush.msrb.mxu3 %v555_v9 }
 0xcaa   :  { %v411_v11 = vadd.f32 %v409_v10, %v885_v57  ;;  %v554_v10 = vld [vmem:[#allocation2 + $0xf8] sm:$0xff] }
 0xcab   :  { %610 = vmatpush.msrb.mxu3 %v554_v10 }
 0xcac   :  { %726 = vtanh.f32 %v411_v11  ;;  %v412_v13 = vmul.f32 0.5, %v411_v11  ;;  %v553_v11 = vld [vmem:[#allocation2 + $0xf0] sm:$0xff] }
 0xcad   :  { %611 = vmatpush.msrb.mxu3 %v553_v11 }
 0xcae   :  { %728 = vtanh.f32 %v412_v13  ;;  %v551_v13 = vld [vmem:[#allocation2 + $0xe0] sm:$0xff] }
 0xcb2   :  { %v727_v12 = vpop.eup %726 }
 0xcb3   :  { %422 = vrot.lane.b32.xlu2 %v727_v12, %s777_s19  ;;  %v552_v12 = vld [vmem:[#allocation2 + $0xe8] sm:$0xff] }
 0xcb4   :  { %v729_v14 = vpop.eup %728  ;;  %612 = vmatpush.msrb.mxu3 %v552_v12 }
 0xcb5   :  { %v414_v15 = vmul.f32 0.5, %v729_v14  ;;  %v690_v14 = vld [vmem:[#allocation2 + $0x122] ss:$0 sm:$0xff] }
 0xcb6   :  { %613 = vmatpush.msrb.mxu3 %v551_v13 }
 0xcb7   :  { %v415_v16 = vadd.f32 0.5, %v414_v15 }
 0xcb9   :  { %v420_v20 = vmul.f32 %v418_v19, %v415_v16 }
 0xd0d   :  { %v423_v17 = vpop.permute.xlu2 %422 }
 0xd0e   :  { %v425_v18 = vmul.f32 %v423_v17, %v415_v16 }
 0xd10   :  { %427 = vrot.lane.b32.xlu0 %v425_v18, %s777_s19 }
 0xd82   :  { %v428_v21 = vpop.permute.xlu0 %427 }
 0xd83   :  { %v430_v22 = vadd.f32 %v428_v21, %v420_v20 }
 0xd85   :  { %730 = vtanh.f32 %v430_v22  ;;  %v473_v41 = vrot.slane %v430_v22, 6  ;;  %v779_v22 = vmov 4  }
 0xd86   :  { %687 = vset.pattern.permute.xlu0 %v779_v22 }
 0xd8b   :  { %v731_v23 = vpop.eup %730 }
 0xd8c   :  { %433 = vrot.lane.b32.xlu1 %v731_v23, %s777_s19  ;;  %v691_v23 = vld [vmem:[#allocation2 + $0x123] ss:$0 sm:$0xff] }
 0xdfe   :  { %v434_v24 = vpop.permute.xlu1 %433 }
 0xdff   :  { %v436_v25 = vmul.f32 %v434_v24, %v415_v16 }
 0xe01   :  { %v438_v27 = vrot.slane %v436_v25, 2 }
 0xe03   :  { %439 = vrot.lane.b32.xlu2 %v438_v27, %s778_s20 }
 0xe5d   :  { %v440_v28 = vpop.permute.xlu2 %439 }
 0xe5e   :  { %672 = vmatmul.msk.f32.vlgmr.msra.gmra.mxu3 %vm90_vm0, %v440_v28  ;;  %v780_v28 = vmov 8.0  }
 0xee1   :  { %v460_v29 = vpop.f32.mrf.mxu3 }
 0xee2   :  { %v464_v30 = vrot.slane %v460_v29, 4 }
 0xee4   :  { %v466_v31 = vadd.f32 %v464_v30, %v885_v57 }
 0xee6   :  { %732 = vtanh.f32 %v466_v31  ;;  %v467_v33 = vmul.f32 0.5, %v466_v31 }
 0xee8   :  { %734 = vtanh.f32 %v467_v33 }
 0xeec   :  { %v733_v32 = vpop.eup %732 }
 0xeed   :  { %477 = vrot.lane.b32.xlu0 %v733_v32, %s777_s19 }
 0xeee   :  { %v735_v35 = vpop.eup %734 }
 0xeef   :  { %v469_v36 = vmul.f32 0.5, %v735_v35 }
 0xef1   :  { %v470_v38 = vadd.f32 0.5, %v469_v36 }
 0xef3   :  { %v475_v37 = vmul.f32 %v473_v41, %v470_v38 }
 0xf5f   :  { %v478_v39 = vpop.permute.xlu0 %477 }
 0xf60   :  { %v480_v40 = vmul.f32 %v478_v39, %v470_v38 }
 0xf62   :  { %482 = vrot.lane.b32.xlu1 %v480_v40, %s777_s19 }
 0xfd4   :  { %v483_v42 = vpop.permute.xlu1 %482 }
 0xfd5   :  { %v485_v43 = vadd.f32 %v483_v42, %v475_v37 }
 0xfd7   :  { %736 = vtanh.f32 %v485_v43  ;;  %v528_v26 = vrot.slane %v485_v43, 6 }
 0xfdd   :  { %v737_v44 = vpop.eup %736 }
 0xfde   :  { %488 = vrot.lane.b32.xlu2 %v737_v44, %s777_s19 }
0x1038   :  { %v489_v45 = vpop.permute.xlu2 %488 }
0x1039   :  { %v491_v46 = vmul.f32 %v489_v45, %v470_v38 }
0x103b   :  { %v493_v47 = vrot.slane %v491_v46, 4 }
0x103d   :  { %494 = vrot.lane.b32.xlu0 %v493_v47, %s778_s20 }
0x10af   :  { %v495_v48 = vpop.permute.xlu0 %494 }
0x10b0   :  { %673 = vmatmul.msk.f32.vlgmr.msra.gmra.mxu1 %vm90_vm0, %v495_v48 }
0x112d   :  { %v515_v49 = vpop.f32.mrf.mxu1 }
0x112e   :  { %v519_v50 = vrot.slane %v515_v49, 2 }
0x1130   :  { %v521_v51 = vadd.f32 %v519_v50, %v885_v57 }
0x1132   :  { %738 = vtanh.f32 %v521_v51  ;;  %v522_v53 = vmul.f32 0.5, %v521_v51 }
0x1134   :  { %740 = vtanh.f32 %v522_v53 }
0x1138   :  { %v739_v52 = vpop.eup %738 }
0x1139   :  { %532 = vrot.lane.b32.xlu1 %v739_v52, %s777_s19 }
0x113a   :  { %v741_v54 = vpop.eup %740 }
0x113b   :  { %v524_v55 = vmul.f32 0.5, %v741_v54 }
0x113d   :  { %v525_v56 = vadd.f32 0.5, %v524_v55 }
0x113f   :  { %v530_v60 = vmul.f32 %v528_v26, %v525_v56 }
0x11ab   :  { %v533_v58 = vpop.permute.xlu1 %532 }
0x11ac   :  { %v535_v59 = vmul.f32 %v533_v58, %v525_v56 }
0x11ae   :  { %537 = vrot.lane.b32.xlu2 %v535_v59, %s777_s19 }
0x1208   :  { %v538_v61 = vpop.permute.xlu2 %537 }
0x1209   :  { %v908_v62 = vadd.f32 %v538_v61, %v530_v60 }
0x120b   :  { %742 = vtanh.f32 %v908_v62 }
0x1211   :  { %v743_v57 = vpop.eup %742 }
0x1212   :  { %543 = vrot.lane.b32.xlu0 %v743_v57, %s777_s19 }
0x1284   :  { %v544_v3 = vpop.permute.xlu0 %543 }
0x1285   :  { %v546_v34 = vmul.f32 %v544_v3, %v525_v56 }
0x1287   :  { %v563_v4 = vrot.slane %v546_v34, 6 }
0x1289   :  { %564 = vrot.lane.b32.xlu1 %v563_v4, %s778_s20 }
0x1291   :  { %646 = vrot.lane.b32.xlu1 %v546_v34, %s778_s20 }
0x12fb   :  { %v565_v5 = vpop.permute.xlu1 %564 }
0x12fc   :  { %674 = vmatmul.msk.f32.vlgmr.msrb.gmra.mxu2 %vm90_vm0, %v565_v5 }
0x1303   :  { %v647_v48 = vpop.permute.xlu1 %646 }
0x1304   :  { %v654_v49 = vsel %vm90_vm0, %v647_v48, %v908_v62 }
0x137f   :  { %v585_v15 = vpop.f32.mrf.mxu2 }
0x1380   :  { %v586_v16 = vadd.f32 %v690_v14, %v585_v15 }
0x1382   :  { %v588_v17 = vmul.f32 0.5, %v586_v16 }
0x1384   :  { %744 = vtanh.f32 %v588_v17 }
0x1385   :  { %746 = vrcp.f32 %v780_v28 }
0x138a   :  { %v745_v18 = vpop.eup %744 }
0x138b   :  { %v590_v19 = vmul.f32 0.5, %v745_v18  ;;  %v747_v29 = vpop.eup %746 }
0x138c   :  { %v636_v30 = vmul.f32 8.0, %v747_v29  ;;  %vm640_vm3 = vweird.f32 %v747_v29 }
0x138d   :  { %v591_v20 = vadd.f32 0.5, %v590_v19 }
0x138e   :  { %v637_v31 = vsub.f32 1.0, %v636_v30 }
0x138f   :  { %v592_v21 = vmul.f32 %v591_v20, %v586_v16 }
0x1390   :  { %v638_v36 = vmul.f32 %v747_v29, %v637_v31 }
0x1391   :  { %675 = vmatmul.msk.f32.vlgmr.msrb.gmra.mxu3 %vm594_vm1, %v592_v21 }
0x1392   :  { %v639_v40 = vadd.f32 %v747_v29, %v638_v36 }
0x1394   :  { %v641_v42 = vsel %vm640_vm3, %v747_v29, %v639_v40 }
0x1414   :  { %v615_v24 = vpop.f32.mrf.mxu3 }
0x1415   :  { %v616_v25 = vadd.f32 %v691_v23, %v615_v24 }
0x1417   :  { %620 = vperm.xlu0 %687, %v616_v25   ;;  %v625_v27 = vsel %vm624_vm2, %v616_v25, 0.0 }
0x1418   :  { %626 = vadd.xlane.f32.xlu2 %v625_v27 }
0x1489   :  { %v621_v43 = vpop.permute.xlu0 %620 }
0x148a   :  { %v623_v44 = vadd.f32 %v621_v43, %v616_v25 }
0x148b   :  { %v627_v32 = vpop.xlane.xlu2 %626 }
0x148c   :  { %v628_v33 = vrot.slane %v627_v32, 4 }
0x148e   :  { %v629_v35 = vadd.f32 %v628_v33, %v627_v32 }
0x1490   :  { %v630_v38 = vrot.slane %v629_v35, 2 }
0x1492   :  { %v631_v39 = vadd.f32 %v630_v38, %v629_v35 }
0x1494   :  { %v632_v41 = vrot.slane %v631_v39, 1 }
0x1496   :  { %v633_v37 = vadd.f32 %v632_v41, %v631_v39 }
0x1498   :  { %676 = vpush %v633_v37 }
0x1499   :  { %678 = vpush %v641_v42 }
0x14c9   :  { %s677_s1 = spop %676 }
0x14ca   :  { %s679_s23 = spop %678 }
0x14cb   :  { %s643_s24 = smul.f32 %s679_s23, %s677_s1 }
0x14cd   :  { %v644_v45 = vstv %s643_s24 }
0x14ce   :  { %v645_v46 = vsub.f32 %v623_v44, %v644_v45 }
0x14d0   :  { %v650_v47 = vrot.slane %v645_v46, 2 }
0x14d2   :  { %651 = vrot.lane.b32.xlu1 %v650_v47, %s778_s20 }
0x1544   :  { %v652_v50 = vpop.permute.xlu1 %651 }
0x1545   :  { %v655_v51 = vsel %vm594_vm1, %v654_v49, %v652_v50 }
0x1546   :  { %v657_v52 = vsel %vm656_vm4, %v655_v51, 0.0 }
0x1547   :  { %658 = vst [vmem:[%s925_s2 - $0x6] sm:$0xc0] %v657_v52 }
0x1548   :  { %663 = vsyncpa [#allocation3], 1 }

</bundles_post_ra>
